<compile_context>
chip_gen: v7x
topology: tpu7x:2x2x1
jax: 0.10.0
libtpu: 0.0.40
codegen_flags: <defaults>
</compile_context>

<pallas_src>
import functools

import jax
import jax.numpy as jnp
from jax.experimental import pallas as pl
from jax.experimental.pallas import tpu as pltpu


def local_aggregator_kernel(mean_ref, h_ref, adj_ref, wd_ref, a_ref, out_ref, *,
                            negative_slope):
    # mean_ref [TB, D]   : mean(cat(context embeddings)) per batch row
    # h_ref    [TB, N, D]: node embeddings
    # adj_ref  [TB, N, N]: int32 edge types in {0,1,2,3,4}
    # wd_ref   [D, D]    : resident weight
    # a_ref    [4, D]    : resident attention vectors a_0..a_3 (stacked as rows)
    # out_ref  [TB, N, D]
    h = h_ref[...]                                   # [TB, N, D]
    adj = adj_ref[...]                               # [TB, N, N]
    TB, N, D = h.shape

    # h_ds = mean_emb @ wd  (resident weight, MXU)
    h_ds = jnp.dot(mean_ref[...], wd_ref[...],
                   preferred_element_type=jnp.float32)          # [TB, D]

    a_all = a_ref[...]                                           # [4, D]
    logits = jnp.full(adj.shape, -9e15, dtype=jnp.float32)       # masked default

    for k in range(4):                       # static unroll over the 4 edge types
        ak = a_all[k:k + 1, :]                                   # [1, D]
        v = h_ds * ak                                            # [TB, D]  = h_ds * a_k
        u = jnp.sum(h * v[:, None, :], axis=-1)                  # [TB, N]  = h . (h_ds*a_k)
        hk = h * ak[None, :, :]                                  # [TB, N, D] = h * a_k
        m = jnp.einsum('bnd,bmd->bnm', hk, h,
                       preferred_element_type=jnp.float32)       # [TB, N, N]
        e = u[:, :, None] + u[:, None, :] + m                    # [TB, N, N]
        e = jnp.where(e > 0, e, negative_slope * e)              # LeakyReLU(alpha)
        logits = jnp.where(adj == (k + 1), e, logits)            # select by edge type

    # numerically-stable softmax over the neighbor axis (exact, no approx reciprocal)
    mx = jnp.max(logits, axis=-1, keepdims=True)
    p = jnp.exp(logits - mx)
    attn = p / jnp.sum(p, axis=-1, keepdims=True)                # [TB, N, N]

    out_ref[...] = jnp.einsum('bnm,bmd->bnd', attn, h,
                              preferred_element_type=jnp.float32)


def local_aggregator_forward(hidden_in, adj, wd, a_stack, *,
                             negative_slope=0.2, tb=64):
    h_locs_l, h_times_l, int_emb, h = hidden_in
    B, N, D = h.shape

    # glue (tiny, plain JAX): mean of the concatenated context embeddings
    mean_emb = jnp.mean(jnp.concatenate([h_locs_l, h_times_l, int_emb], axis=1),
                        axis=1)                                  # [B, D]
    adj = adj.astype(jnp.int32)

    # batch-tile size: whole batch if small, otherwise a multiple of 8 rows
    if B <= tb:
        tb = B
    else:
        tb = max(8, (tb // 8) * 8)
    Bp = pl.cdiv(B, tb) * tb
    pad = Bp - B
    if pad:                                   # pad-and-slice instead of asserting
        mean_emb = jnp.pad(mean_emb, ((0, pad), (0, 0)))
        h = jnp.pad(h, ((0, pad), (0, 0), (0, 0)))
        adj = jnp.pad(adj, ((0, pad), (0, 0), (0, 0)))

    kernel = functools.partial(local_aggregator_kernel,
                               negative_slope=float(negative_slope))

    out = pl.pallas_call(
        kernel,
        out_shape=jax.ShapeDtypeStruct((Bp, N, D), jnp.float32),
        grid_spec=pltpu.PrefetchScalarGridSpec(
            num_scalar_prefetch=0,
            grid=(Bp // tb,),
            in_specs=[
                pl.BlockSpec((tb, D), lambda i: (i, 0)),          # mean context emb
                pl.BlockSpec((tb, N, D), lambda i: (i, 0, 0)),    # h
                pl.BlockSpec((tb, N, N), lambda i: (i, 0, 0)),    # adj (int32)
                pl.BlockSpec((D, D), lambda i: (0, 0)),           # wd   (resident)
                pl.BlockSpec((4, D), lambda i: (0, 0)),           # a_0..a_3 (resident)
            ],
            out_specs=pl.BlockSpec((tb, N, D), lambda i: (i, 0, 0)),
        ),
        compiler_params=pltpu.CompilerParams(
            dimension_semantics=("parallel",)),
    )(mean_emb, h, adj, wd, a_stack)
    return out[:B]


def reference_forward(hidden_in, adj, wd, a_stack, negative_slope):
    # Literal JAX transcription of the PyTorch forward (materializes a_input).
    h_locs_l, h_times_l, int_emb, h = hidden_in
    B, N, D = h.shape
    h_ds = jnp.matmul(
        jnp.mean(jnp.concatenate([h_locs_l, h_times_l, int_emb], axis=1), axis=1),
        wd, precision='highest').reshape(B, 1, D)
    h_i = jnp.repeat(h, N, axis=1)            # [B, N*N, D]: row i*N+j -> h_i
    h_j = jnp.tile(h, (1, N, 1))              # [B, N*N, D]: row i*N+j -> h_j
    a_input = (h_i * h_ds + h_j * h_ds + h_i * h_j).reshape(B, N, N, D)
    logits = jnp.full((B, N, N), -9e15, dtype=jnp.float32)
    for k in range(4):
        e = jnp.einsum('bijd,d->bij', a_input, a_stack[k], precision='highest')
        e = jax.nn.leaky_relu(e, negative_slope=negative_slope)
        logits = jnp.where(adj == (k + 1), e, logits)
    attn = jax.nn.softmax(logits, axis=-1)
    return jnp.einsum('bij,bjd->bid', attn, h, precision='highest')


if __name__ == "__main__":
    # Small shapes implied by the module: batch=2, session length N=16, dim=32,
    # three context sequences of length 8 each.
    B, N, D, L = 2, 16, 32, 8
    negative_slope = 0.2       # LeakyReLU alpha

    key = jax.random.PRNGKey(0)
    ks = jax.random.split(key, 7)
    h_locs_l = jax.random.normal(ks[0], (B, L, D), dtype=jnp.float32)
    h_times_l = jax.random.normal(ks[1], (B, L, D), dtype=jnp.float32)
    int_emb = jax.random.normal(ks[2], (B, L, D), dtype=jnp.float32)
    h = jax.random.normal(ks[3], (B, N, D), dtype=jnp.float32)
    adj = jax.random.randint(ks[4], (B, N, N), 0, 5, dtype=jnp.int32)  # edge types 0..4

    wd = (jax.random.normal(ks[5], (D, D), dtype=jnp.float32) / jnp.sqrt(D))
    a_stack = (jax.random.normal(ks[6], (4, D), dtype=jnp.float32) / jnp.sqrt(D))

    hidden_in = (h_locs_l, h_times_l, int_emb, h)
    out = local_aggregator_forward(hidden_in, adj, wd, a_stack,
                                   negative_slope=negative_slope, tb=64)
    out = jax.block_until_ready(out)

    ref = reference_forward(hidden_in, adj, wd, a_stack, negative_slope)
    assert out.shape == (B, N, D)
    assert jnp.allclose(out, ref, atol=2e-2, rtol=2e-2), "mismatch vs JAX reference"

    print("KERNEL_OK")
</pallas_src>

<mosaic_0001>
module attributes {stable_mosaic.version = 11 : i64} {
  func.func @local_aggregator_kernel(%arg0: i32, %arg1: memref<2x32xf32, #tpu.memory_space<vmem>>, %arg2: memref<2x16x32xf32, #tpu.memory_space<vmem>>, %arg3: memref<2x16x16xi32, #tpu.memory_space<vmem>>, %arg4: memref<32x32xf32, #tpu.memory_space<vmem>>, %arg5: memref<4x32xf32, #tpu.memory_space<vmem>>, %arg6: memref<2x16x32xf32, #tpu.memory_space<vmem>>) attributes {dimension_semantics = [#tpu.dimension_semantics<parallel>], iteration_bounds = array<i64: 1>, scalar_prefetch = 0 : i64, scratch_operands = 0 : i64, tpu.core_type = #tpu.core_type<tc>, window_params = [{transform_indices = @transform_0, window_bounds = array<i64: 2, 32>}, {transform_indices = @transform_1, window_bounds = array<i64: 2, 16, 32>}, {transform_indices = @transform_2, window_bounds = array<i64: 2, 16, 16>}, {pipeline_mode = #tpu.pipeline_mode<synchronous>, transform_indices = @transform_3, window_bounds = array<i64: 32, 32>}, {pipeline_mode = #tpu.pipeline_mode<synchronous>, transform_indices = @transform_4, window_bounds = array<i64: 4, 32>}, {transform_indices = @transform_5, window_bounds = array<i64: 2, 16, 32>}]} {
    %c0 = arith.constant 0 : index
    %c0_0 = arith.constant 0 : index
    %c0_1 = arith.constant 0 : index
    %0 = vector.load %arg2[%c0, %c0_0, %c0_1] : memref<2x16x32xf32, #tpu.memory_space<vmem>>, vector<2x16x32xf32>
    %c0_2 = arith.constant 0 : index
    %c0_3 = arith.constant 0 : index
    %c0_4 = arith.constant 0 : index
    %1 = vector.load %arg3[%c0_2, %c0_3, %c0_4] : memref<2x16x16xi32, #tpu.memory_space<vmem>>, vector<2x16x16xi32>
    %c0_5 = arith.constant 0 : index
    %c0_6 = arith.constant 0 : index
    %2 = vector.load %arg1[%c0_5, %c0_6] : memref<2x32xf32, #tpu.memory_space<vmem>>, vector<2x32xf32>
    %c0_7 = arith.constant 0 : index
    %c0_8 = arith.constant 0 : index
    %3 = vector.load %arg4[%c0_7, %c0_8] : memref<32x32xf32, #tpu.memory_space<vmem>>, vector<32x32xf32>
    %cst = arith.constant dense<0.000000e+00> : vector<2x32xf32>
    %4 = tpu.matmul %2, %3, %cst {dimension_numbers = #tpu.dot_dimension_numbers<[1], [0], [0], [1], [0, 0, 1, 1], [], []>} : vector<2x32xf32>, vector<32x32xf32>, vector<2x32xf32> -> vector<2x32xf32>
    %c0_9 = arith.constant 0 : index
    %c0_10 = arith.constant 0 : index
    %5 = vector.load %arg5[%c0_9, %c0_10] : memref<4x32xf32, #tpu.memory_space<vmem>>, vector<4x32xf32>
    %cst_11 = arith.constant -9.000000e+15 : f32
    %6 = vector.broadcast %cst_11 : f32 to vector<2x16x16xf32>
    %7 = vector.extract_strided_slice %5 {offsets = [0, 0], sizes = [1, 32], strides = [1, 1]} : vector<4x32xf32> to vector<1x32xf32>
    %8 = vector.broadcast %7 : vector<1x32xf32> to vector<2x32xf32>
    %9 = arith.mulf %4, %8 : vector<2x32xf32>
    %10 = vector.shape_cast %9 : vector<2x32xf32> to vector<2x1x32xf32>
    %11 = vector.broadcast %10 : vector<2x1x32xf32> to vector<2x16x32xf32>
    %12 = arith.mulf %0, %11 : vector<2x16x32xf32>
    %cst_12 = arith.constant dense<0.000000e+00> : vector<2x16xf32>
    %13 = vector.multi_reduction <add>, %12, %cst_12 [2] : vector<2x16x32xf32> to vector<2x16xf32>
    %14 = vector.shape_cast %7 : vector<1x32xf32> to vector<1x1x32xf32>
    %15 = vector.broadcast %14 : vector<1x1x32xf32> to vector<2x16x32xf32>
    %16 = arith.mulf %0, %15 : vector<2x16x32xf32>
    "tpu.trace_start"() <{level = 10 : i32, message = "bnd,bmd->bnm"}> : () -> ()
    %cst_13 = arith.constant dense<0.000000e+00> : vector<2x16x16xf32>
    %17 = tpu.matmul %16, %0, %cst_13 {dimension_numbers = #tpu.dot_dimension_numbers<[2], [2], [1], [1], [0, 0, 0, 1, 1, 1], [0], [0]>} : vector<2x16x32xf32>, vector<2x16x32xf32>, vector<2x16x16xf32> -> vector<2x16x16xf32>
    "tpu.trace_stop"() : () -> ()
    %18 = vector.shape_cast %13 : vector<2x16xf32> to vector<2x16x1xf32>
    %19 = vector.shape_cast %13 : vector<2x16xf32> to vector<2x1x16xf32>
    %20 = vector.broadcast %18 : vector<2x16x1xf32> to vector<2x16x16xf32>
    %21 = vector.broadcast %19 : vector<2x1x16xf32> to vector<2x16x16xf32>
    %22 = arith.addf %20, %21 : vector<2x16x16xf32>
    %23 = arith.addf %22, %17 : vector<2x16x16xf32>
    %cst_14 = arith.constant 0.000000e+00 : f32
    %24 = vector.broadcast %cst_14 : f32 to vector<2x16x16xf32>
    %25 = arith.cmpf ogt, %23, %24 : vector<2x16x16xf32>
    %cst_15 = arith.constant 2.000000e-01 : f32
    %26 = vector.broadcast %cst_15 : f32 to vector<2x16x16xf32>
    %27 = arith.mulf %26, %23 : vector<2x16x16xf32>
    %28 = arith.select %25, %23, %27 : vector<2x16x16xi1>, vector<2x16x16xf32>
    %c1_i32 = arith.constant 1 : i32
    %29 = vector.broadcast %c1_i32 : i32 to vector<2x16x16xi32>
    %30 = arith.cmpi eq, %1, %29 : vector<2x16x16xi32>
    %31 = arith.select %30, %28, %6 : vector<2x16x16xi1>, vector<2x16x16xf32>
    %32 = vector.extract_strided_slice %5 {offsets = [1, 0], sizes = [1, 32], strides = [1, 1]} : vector<4x32xf32> to vector<1x32xf32>
    %33 = vector.broadcast %32 : vector<1x32xf32> to vector<2x32xf32>
    %34 = arith.mulf %4, %33 : vector<2x32xf32>
    %35 = vector.shape_cast %34 : vector<2x32xf32> to vector<2x1x32xf32>
    %36 = vector.broadcast %35 : vector<2x1x32xf32> to vector<2x16x32xf32>
    %37 = arith.mulf %0, %36 : vector<2x16x32xf32>
    %cst_16 = arith.constant dense<0.000000e+00> : vector<2x16xf32>
    %38 = vector.multi_reduction <add>, %37, %cst_16 [2] : vector<2x16x32xf32> to vector<2x16xf32>
    %39 = vector.shape_cast %32 : vector<1x32xf32> to vector<1x1x32xf32>
    %40 = vector.broadcast %39 : vector<1x1x32xf32> to vector<2x16x32xf32>
    %41 = arith.mulf %0, %40 : vector<2x16x32xf32>
    "tpu.trace_start"() <{level = 10 : i32, message = "bnd,bmd->bnm"}> : () -> ()
    %cst_17 = arith.constant dense<0.000000e+00> : vector<2x16x16xf32>
    %42 = tpu.matmul %41, %0, %cst_17 {dimension_numbers = #tpu.dot_dimension_numbers<[2], [2], [1], [1], [0, 0, 0, 1, 1, 1], [0], [0]>} : vector<2x16x32xf32>, vector<2x16x32xf32>, vector<2x16x16xf32> -> vector<2x16x16xf32>
    "tpu.trace_stop"() : () -> ()
    %43 = vector.shape_cast %38 : vector<2x16xf32> to vector<2x16x1xf32>
    %44 = vector.shape_cast %38 : vector<2x16xf32> to vector<2x1x16xf32>
    %45 = vector.broadcast %43 : vector<2x16x1xf32> to vector<2x16x16xf32>
    %46 = vector.broadcast %44 : vector<2x1x16xf32> to vector<2x16x16xf32>
    %47 = arith.addf %45, %46 : vector<2x16x16xf32>
    %48 = arith.addf %47, %42 : vector<2x16x16xf32>
    %cst_18 = arith.constant 0.000000e+00 : f32
    %49 = vector.broadcast %cst_18 : f32 to vector<2x16x16xf32>
    %50 = arith.cmpf ogt, %48, %49 : vector<2x16x16xf32>
    %cst_19 = arith.constant 2.000000e-01 : f32
    %51 = vector.broadcast %cst_19 : f32 to vector<2x16x16xf32>
    %52 = arith.mulf %51, %48 : vector<2x16x16xf32>
    %53 = arith.select %50, %48, %52 : vector<2x16x16xi1>, vector<2x16x16xf32>
    %c2_i32 = arith.constant 2 : i32
    %54 = vector.broadcast %c2_i32 : i32 to vector<2x16x16xi32>
    %55 = arith.cmpi eq, %1, %54 : vector<2x16x16xi32>
    %56 = arith.select %55, %53, %31 : vector<2x16x16xi1>, vector<2x16x16xf32>
    %57 = vector.extract_strided_slice %5 {offsets = [2, 0], sizes = [1, 32], strides = [1, 1]} : vector<4x32xf32> to vector<1x32xf32>
    %58 = vector.broadcast %57 : vector<1x32xf32> to vector<2x32xf32>
    %59 = arith.mulf %4, %58 : vector<2x32xf32>
    %60 = vector.shape_cast %59 : vector<2x32xf32> to vector<2x1x32xf32>
    %61 = vector.broadcast %60 : vector<2x1x32xf32> to vector<2x16x32xf32>
    %62 = arith.mulf %0, %61 : vector<2x16x32xf32>
    %cst_20 = arith.constant dense<0.000000e+00> : vector<2x16xf32>
    %63 = vector.multi_reduction <add>, %62, %cst_20 [2] : vector<2x16x32xf32> to vector<2x16xf32>
    %64 = vector.shape_cast %57 : vector<1x32xf32> to vector<1x1x32xf32>
    %65 = vector.broadcast %64 : vector<1x1x32xf32> to vector<2x16x32xf32>
    %66 = arith.mulf %0, %65 : vector<2x16x32xf32>
    "tpu.trace_start"() <{level = 10 : i32, message = "bnd,bmd->bnm"}> : () -> ()
    %cst_21 = arith.constant dense<0.000000e+00> : vector<2x16x16xf32>
    %67 = tpu.matmul %66, %0, %cst_21 {dimension_numbers = #tpu.dot_dimension_numbers<[2], [2], [1], [1], [0, 0, 0, 1, 1, 1], [0], [0]>} : vector<2x16x32xf32>, vector<2x16x32xf32>, vector<2x16x16xf32> -> vector<2x16x16xf32>
    "tpu.trace_stop"() : () -> ()
    %68 = vector.shape_cast %63 : vector<2x16xf32> to vector<2x16x1xf32>
    %69 = vector.shape_cast %63 : vector<2x16xf32> to vector<2x1x16xf32>
    %70 = vector.broadcast %68 : vector<2x16x1xf32> to vector<2x16x16xf32>
    %71 = vector.broadcast %69 : vector<2x1x16xf32> to vector<2x16x16xf32>
    %72 = arith.addf %70, %71 : vector<2x16x16xf32>
    %73 = arith.addf %72, %67 : vector<2x16x16xf32>
    %cst_22 = arith.constant 0.000000e+00 : f32
    %74 = vector.broadcast %cst_22 : f32 to vector<2x16x16xf32>
    %75 = arith.cmpf ogt, %73, %74 : vector<2x16x16xf32>
    %cst_23 = arith.constant 2.000000e-01 : f32
    %76 = vector.broadcast %cst_23 : f32 to vector<2x16x16xf32>
    %77 = arith.mulf %76, %73 : vector<2x16x16xf32>
    %78 = arith.select %75, %73, %77 : vector<2x16x16xi1>, vector<2x16x16xf32>
    %c3_i32 = arith.constant 3 : i32
    %79 = vector.broadcast %c3_i32 : i32 to vector<2x16x16xi32>
    %80 = arith.cmpi eq, %1, %79 : vector<2x16x16xi32>
    %81 = arith.select %80, %78, %56 : vector<2x16x16xi1>, vector<2x16x16xf32>
    %82 = vector.extract_strided_slice %5 {offsets = [3, 0], sizes = [1, 32], strides = [1, 1]} : vector<4x32xf32> to vector<1x32xf32>
    %83 = vector.broadcast %82 : vector<1x32xf32> to vector<2x32xf32>
    %84 = arith.mulf %4, %83 : vector<2x32xf32>
    %85 = vector.shape_cast %84 : vector<2x32xf32> to vector<2x1x32xf32>
    %86 = vector.broadcast %85 : vector<2x1x32xf32> to vector<2x16x32xf32>
    %87 = arith.mulf %0, %86 : vector<2x16x32xf32>
    %cst_24 = arith.constant dense<0.000000e+00> : vector<2x16xf32>
    %88 = vector.multi_reduction <add>, %87, %cst_24 [2] : vector<2x16x32xf32> to vector<2x16xf32>
    %89 = vector.shape_cast %82 : vector<1x32xf32> to vector<1x1x32xf32>
    %90 = vector.broadcast %89 : vector<1x1x32xf32> to vector<2x16x32xf32>
    %91 = arith.mulf %0, %90 : vector<2x16x32xf32>
    "tpu.trace_start"() <{level = 10 : i32, message = "bnd,bmd->bnm"}> : () -> ()
    %cst_25 = arith.constant dense<0.000000e+00> : vector<2x16x16xf32>
    %92 = tpu.matmul %91, %0, %cst_25 {dimension_numbers = #tpu.dot_dimension_numbers<[2], [2], [1], [1], [0, 0, 0, 1, 1, 1], [0], [0]>} : vector<2x16x32xf32>, vector<2x16x32xf32>, vector<2x16x16xf32> -> vector<2x16x16xf32>
    "tpu.trace_stop"() : () -> ()
    %93 = vector.shape_cast %88 : vector<2x16xf32> to vector<2x16x1xf32>
    %94 = vector.shape_cast %88 : vector<2x16xf32> to vector<2x1x16xf32>
    %95 = vector.broadcast %93 : vector<2x16x1xf32> to vector<2x16x16xf32>
    %96 = vector.broadcast %94 : vector<2x1x16xf32> to vector<2x16x16xf32>
    %97 = arith.addf %95, %96 : vector<2x16x16xf32>
    %98 = arith.addf %97, %92 : vector<2x16x16xf32>
    %cst_26 = arith.constant 0.000000e+00 : f32
    %99 = vector.broadcast %cst_26 : f32 to vector<2x16x16xf32>
    %100 = arith.cmpf ogt, %98, %99 : vector<2x16x16xf32>
    %cst_27 = arith.constant 2.000000e-01 : f32
    %101 = vector.broadcast %cst_27 : f32 to vector<2x16x16xf32>
    %102 = arith.mulf %101, %98 : vector<2x16x16xf32>
    %103 = arith.select %100, %98, %102 : vector<2x16x16xi1>, vector<2x16x16xf32>
    %c4_i32 = arith.constant 4 : i32
    %104 = vector.broadcast %c4_i32 : i32 to vector<2x16x16xi32>
    %105 = arith.cmpi eq, %1, %104 : vector<2x16x16xi32>
    %106 = arith.select %105, %103, %81 : vector<2x16x16xi1>, vector<2x16x16xf32>
    %cst_28 = arith.constant dense<0xFF800000> : vector<2x16xf32>
    %107 = vector.multi_reduction <maximumf>, %106, %cst_28 [2] : vector<2x16x16xf32> to vector<2x16xf32>
    %108 = vector.shape_cast %107 : vector<2x16xf32> to vector<2x16x1xf32>
    %109 = vector.broadcast %108 : vector<2x16x1xf32> to vector<2x16x16xf32>
    %110 = arith.subf %106, %109 : vector<2x16x16xf32>
    %111 = math.exp %110 : vector<2x16x16xf32>
    %cst_29 = arith.constant dense<0.000000e+00> : vector<2x16xf32>
    %112 = vector.multi_reduction <add>, %111, %cst_29 [2] : vector<2x16x16xf32> to vector<2x16xf32>
    %113 = vector.shape_cast %112 : vector<2x16xf32> to vector<2x16x1xf32>
    %114 = vector.broadcast %113 : vector<2x16x1xf32> to vector<2x16x16xf32>
    %115 = arith.divf %111, %114 : vector<2x16x16xf32>
    "tpu.trace_start"() <{level = 10 : i32, message = "bnm,bmd->bnd"}> : () -> ()
    %cst_30 = arith.constant dense<0.000000e+00> : vector<2x16x32xf32>
    %116 = tpu.matmul %115, %0, %cst_30 {dimension_numbers = #tpu.dot_dimension_numbers<[2], [1], [1], [2], [0, 0, 0, 1, 1, 2], [0], [0]>} : vector<2x16x16xf32>, vector<2x16x32xf32>, vector<2x16x32xf32> -> vector<2x16x32xf32>
    "tpu.trace_stop"() : () -> ()
    %c0_31 = arith.constant 0 : index
    %c0_32 = arith.constant 0 : index
    %c0_33 = arith.constant 0 : index
    %117 = vector.load %arg6[%c0_31, %c0_32, %c0_33] : memref<2x16x32xf32, #tpu.memory_space<vmem>>, vector<2x16x32xf32>
    tpu.vector_store %arg6[%c0_31, %c0_32, %c0_33], %116 {strides = array<i32>} : memref<2x16x32xf32, #tpu.memory_space<vmem>>, vector<2x16x32xf32>,
    return
  }
  func.func @transform_0(%arg0: i32) -> (i32, i32) {
    %c0_i32 = arith.constant 0 : i32
    %c0_i32_0 = arith.constant 0 : i32
    return %arg0, %c0_i32 : i32, i32
  }
  func.func @transform_1(%arg0: i32) -> (i32, i32, i32) {
    %c0_i32 = arith.constant 0 : i32
    %c0_i32_0 = arith.constant 0 : i32
    %c0_i32_1 = arith.constant 0 : i32
    return %arg0, %c0_i32, %c0_i32_0 : i32, i32, i32
  }
  func.func @transform_2(%arg0: i32) -> (i32, i32, i32) {
    %c0_i32 = arith.constant 0 : i32
    %c0_i32_0 = arith.constant 0 : i32
    %c0_i32_1 = arith.constant 0 : i32
    return %arg0, %c0_i32, %c0_i32_0 : i32, i32, i32
  }
  func.func @transform_3(%arg0: i32) -> (i32, i32) {
    %c0_i32 = arith.constant 0 : i32
    %c0_i32_0 = arith.constant 0 : i32
    %c0_i32_1 = arith.constant 0 : i32
    return %c0_i32, %c0_i32_0 : i32, i32
  }
  func.func @transform_4(%arg0: i32) -> (i32, i32) {
    %c0_i32 = arith.constant 0 : i32
    %c0_i32_0 = arith.constant 0 : i32
    %c0_i32_1 = arith.constant 0 : i32
    return %c0_i32, %c0_i32_0 : i32, i32
  }
  func.func @transform_5(%arg0: i32) -> (i32, i32, i32) {
    %c0_i32 = arith.constant 0 : i32
    %c0_i32_0 = arith.constant 0 : i32
    %c0_i32_1 = arith.constant 0 : i32
    return %arg0, %c0_i32, %c0_i32_0 : i32, i32, i32
  }
}

</mosaic_0001>

<bundles_post_ra>
// kernel: tpu_custom_call.1
= control target key start
LH: loop header
LB: loop body
LE: loop exit
PB: predicated region body
PF: predicated region fallthrough
CT: control target
= control target key end

     0   :  { %10 = vsyncpa [#allocation3], 0  ;;  %s2331_s0 = inlined_call_operand.hbm [shape: f32[2,32], index: 0, kind: input, shape index: {}]   ;;  %s2332_s1 = inlined_call_operand.hbm [shape: f32[2,16,32], index: 1, kind: input, shape index: {}]   ;;  %s2333_s2 = inlined_call_operand.hbm [shape: s32[2,16,16], index: 2, kind: input, shape index: {}]   ;;  %s2334_s3 = inlined_call_operand.hbm [shape: f32[32,32], index: 3, kind: input, shape index: {}]   ;;  %s2335_s4 = inlined_call_operand.vmem [shape: f32[4,32], index: 4, kind: input, shape index: {}]   ;;  %s2336_s5 = inlined_call_operand.hbm [shape: f32[2,16,32], index: 5, kind: output, shape index: {}]  }
   0x1   :  { %11 = vsyncpa [#allocation6], 0 }
   0x2   :  { %12 = vsyncpa [#allocation9], 0 }
   0x3   :  { %13 = vsyncpa [#allocation4], 0  ;;  %s1920_s18 = smov [#allocation5]   ;;  %s1802_s22 = scalar_lea.hbm %s2332_s1, 512 }
   0x4   :  { %s29_s19 = sshll.u32 %s1920_s18, 4  ;;  %p1803_p0 = scmp.ne.s32.totalorder %s2332_s1, %s1802_s22  ;;  %s30_s19 = int_to_ptr.vmem [resolvable:$true] %s29_s19 }
   0x5   :  { %p1806_p1 = scmp.lt.u32.totalorder %s1802_s22, %s2332_s1 }
   0x7   :  { %p1808_p2 = pnand %p1806_p1, %p1803_p0 }
   0x9   :  { %1811 = shalt.err (!%p1808_p2)
}
   0xa   :  { %s1812_s27 = scalar_lea.vmem %s30_s19, 512  ;;  %p1817_p4 = scmp.lt.s32.totalorder %s30_s19, %s30_s19 }
   0xb   :  { %p1813_p3 = scmp.ne.s32.totalorder %s30_s19, %s1812_s27  ;;  %p1818_p5 = scmp.lt.s32.totalorder %s1812_s27, %s1812_s27 }
   0xd   :  { %p1819_p6 = por %p1818_p5, %p1817_p4 }
   0xf   :  { %p1820_p7 = pnand %p1819_p6, %p1813_p3 }
  0x11   :  { %1823 = shalt.err (!%p1820_p7)
}
  0x12   :  { %s1921_s28 = smov 128   ;;  %s1922_s29 = smov 8  }
  0x13   :  { %35 = dma.hbm_to_vmem [thread:$0]  %s2332_s1, 512, %s30_s19, [#allocation6], %s1921_s28, %s1921_s28, %s1922_s29  }
  0x14   :  { %s1923_s7 = smov [#allocation2]   ;;  %s1924_s9 = smov [#allocation7]  }
  0x15   :  { %s20_s8 = sshll.u32 %s1923_s7, 4  ;;  %s41_s10 = sshll.u32 %s1924_s9, 4  ;;  %s21_s8 = int_to_ptr.vmem [resolvable:$true] %s20_s8  ;;  %s42_s10 = int_to_ptr.vmem [resolvable:$true] %s41_s10 }
  0x16   :  { %s1824_s13 = scalar_lea.hbm %s2331_s0, 32 }
  0x17   :  { %p1825_p8 = scmp.ne.s32.totalorder %s2331_s0, %s1824_s13  ;;  %p1828_p9 = scmp.lt.u32.totalorder %s1824_s13, %s2331_s0 }
  0x19   :  { %p1830_p10 = pnand %p1828_p9, %p1825_p8 }
  0x1b   :  { %1833 = shalt.err (!%p1830_p10)
}
  0x1c   :  { %s1834_s1 = scalar_lea.vmem %s21_s8, 32  ;;  %p1839_p12 = scmp.lt.s32.totalorder %s21_s8, %s21_s8 }
  0x1d   :  { %p1835_p11 = scmp.ne.s32.totalorder %s21_s8, %s1834_s1  ;;  %p1840_p13 = scmp.lt.s32.totalorder %s1834_s1, %s1834_s1 }
  0x1f   :  { %p1841_p0 = por %p1840_p13, %p1839_p12 }
  0x21   :  { %p1842_p1 = pnand %p1841_p0, %p1835_p11 }
  0x23   :  { %1845 = shalt.err (!%p1842_p1)
}
  0x24   :  { %23 = dma.hbm_to_vmem [thread:$0]  %s2331_s0, 32, %s21_s8, [#allocation3]  }
  0x25   :  { %s1846_s22 = scalar_lea.hbm %s2333_s2, 512 }
  0x26   :  { %p1847_p2 = scmp.ne.s32.totalorder %s2333_s2, %s1846_s22  ;;  %p1850_p3 = scmp.lt.u32.totalorder %s1846_s22, %s2333_s2 }
  0x28   :  { %p1852_p4 = pnand %p1850_p3, %p1847_p2 }
  0x2a   :  { %1855 = shalt.err (!%p1852_p4)
}
  0x2b   :  { %s1856_s27 = scalar_lea.vmem %s42_s10, 512  ;;  %p1861_p6 = scmp.lt.s32.totalorder %s42_s10, %s42_s10 }
  0x2c   :  { %p1857_p5 = scmp.ne.s32.totalorder %s42_s10, %s1856_s27  ;;  %p1862_p7 = scmp.lt.s32.totalorder %s1856_s27, %s1856_s27 }
  0x2e   :  { %p1863_p8 = por %p1862_p7, %p1861_p6 }
  0x30   :  { %p1864_p9 = pnand %p1863_p8, %p1857_p5 }
  0x32   :  { %1867 = shalt.err (!%p1864_p9)
}
  0x33   :  { %47 = dma.hbm_to_vmem [thread:$0]  %s2333_s2, 512, %s42_s10, [#allocation6], %s1921_s28, %s1921_s28, %s1922_s29  }
  0x34   :  { %s1925_s6 = smov [#allocation8]   ;;  %s1868_s11 = scalar_lea.hbm %s2334_s3, 512 }
  0x35   :  { %s53_s7 = sshll.u32 %s1925_s6, 4  ;;  %p1869_p10 = scmp.ne.s32.totalorder %s2334_s3, %s1868_s11  ;;  %s54_s7 = int_to_ptr.vmem [resolvable:$true] %s53_s7 }
  0x36   :  { %p1872_p11 = scmp.lt.u32.totalorder %s1868_s11, %s2334_s3 }
  0x38   :  { %p1874_p12 = pnand %p1872_p11, %p1869_p10 }
  0x3a   :  { %1877 = shalt.err (!%p1874_p12)
}
  0x3b   :  { %s1878_s16 = scalar_lea.vmem %s54_s7, 512  ;;  %p1883_p0 = scmp.lt.s32.totalorder %s54_s7, %s54_s7 }
  0x3c   :  { %p1879_p13 = scmp.ne.s32.totalorder %s54_s7, %s1878_s16  ;;  %p1884_p1 = scmp.lt.s32.totalorder %s1878_s16, %s1878_s16 }
  0x3e   :  { %p1885_p2 = por %p1884_p1, %p1883_p0 }
  0x40   :  { %p1886_p3 = pnand %p1885_p2, %p1879_p13 }
  0x42   :  { %1889 = shalt.err (!%p1886_p3)
}
  0x43   :  { %59 = dma.hbm_to_vmem [thread:$0]  %s2334_s3, 512, %s54_s7, [#allocation9], %s1921_s28, %s1921_s28, %s1922_s29  }
  0x44   :  { %1912 = dma.done.wait [#allocation3], 32  }
  0x45   :  { %1913 = vsyncadd [#allocation3], 4294967264 }
  0x46   :  { %1914 = dma.done.wait [#allocation6], 1024  }
  0x47   :  { %1915 = vsyncadd [#allocation6], 4294966272 }
  0x48   :  { %1916 = dma.done.wait [#allocation9], 512  }
  0x49   :  { %1917 = vsyncadd [#allocation9], 4294966784  ;;  %v1926_v0 = vmov 0.0|0.0   ;;  %vm1927_vm0 = vmmov 0   ;;  %v1928_v1 = vmov 0.0   ;;  %v162_v2 = vlaneseq  ;;  %v83_v5 = vld [vmem:[#allocation8] sm:$0xff] }
  0x4a   :  { %1713 = vmatprep.subr.bf16.mxu0 %v1926_v0  ;;  %1640 = vmatprep.mubr.msk.f32.mxu0 %vm1927_vm0, %v1928_v1  ;;  %v84_v6 = vld [vmem:[#allocation8 + $0x8] sm:$0xff]  ;;  %v85_v7 = vld [vmem:[#allocation8 + $0x10] sm:$0xff]  ;;  %vm2337_vm1 = vcmask 261120   ;;  %v86_v9 = vld [vmem:[#allocation8 + $0x18] sm:$0xff]  ;;  %v1929_v43 = vmov 1966171168  }
  0x4b   :  { %v2019_v3 = vshrl.u32 %v162_v2, 7  ;;  %v1714_v8 = vpack.c.bf16 %v84_v6, %v83_v5  ;;  %v2024_v10 = vld [vmem:[#allocation5] sm:$0xff]  ;;  %vm2028_vm2 = vmpackc.low %vm2337_vm1, %vm2337_vm1  ;;  %v2032_v12 = vld [vmem:[#allocation5 + $0x8] sm:$0xff]  ;;  %v1717_v16 = vpack.c.bf16 %v86_v9, %v85_v7  ;;  %v169_v44 = vunpack.c.l.s4 %v1929_v43 }
  0x4c   :  { %v161_v13 = vld [vmem:[%s2335_s4] sm:$0xf]  ;;  %v1719_v17 = vpack.c.bf16 %v2032_v12, %v2024_v10  ;;  %v82_v23 = vld [vmem:[#allocation2] sm:$0x3]  ;;  %vm409_vm3 = vcmask 130112   ;;  %vm1320_vm14 = vcmask 130048  }
  0x4d   :  { %v2022_v4 = vsub.s32 0, %v2019_v3  ;;  %v2037_v14 = vld [vmem:[#allocation5 + $0x10] sm:$0xff]  ;;  %v470_v15 = vsub.s32 1, %v2019_v3  ;;  %1715 = vmatpush3.bf16.msra.mxu0 %v1714_v8  ;;  %v2045_v19 = vld [vmem:[#allocation5 + $0x18] sm:$0xff]  ;;  %v754_v27 = vsub.s32 2, %v2019_v3  ;;  %v1038_v31 = vsub.s32 3, %v2019_v3 }
  0x4e   :  { %1716 = vmatprep.subr.bf16.mxu0 %v1926_v0  ;;  %v2049_v20 = vpack.c.bf16 %v2045_v19, %v2037_v14  ;;  %1721 = vmatprep.subr.msk.bf16.mxu1 %vm2028_vm2, %v1719_v17  ;;  %v170_v45 = vunpack.c.0.s8 %v169_v44  ;;  %s1930_s4 = smov [#allocation10]  }
  0x4f   :  { %v2043_v18 = vrot.slane %v161_v13, %v2022_v4  ;;  %1724 = vmatpush3.bf16.xpose.msk.msra.mxu1 %vm2028_vm2, %v1719_v17  ;;  %v471_v22 = vrot.slane %v161_v13, %v470_v15  ;;  %v755_v28 = vrot.slane %v161_v13, %v754_v27  ;;  %v1039_v34 = vrot.slane %v161_v13, %v1038_v31  ;;  %s1536_s1 = sshll.u32 %s1930_s4, 4  ;;  %s1537_s1 = int_to_ptr.vmem [resolvable:$true] %s1536_s1 }
  0x50   :  { %1733 = vmatprep.subr.msk.bf16.mxu1 %vm2028_vm2, %v1719_v17  ;;  %v173_v46 = vsub.s32 %v170_v45, %v2019_v3  ;;  %s1890_s18 = scalar_lea.vmem %s1537_s1, 512  ;;  %p1895_p5 = scmp.lt.s32.totalorder %s1537_s1, %s1537_s1 }
  0x51   :  { %v216_v21 = vmul.f32 %v2043_v18, %v2024_v10  ;;  %1718 = vmatpush3.bf16.msra.mxu0 %v1717_v16  ;;  %v218_v24 = vmul.f32 %v2043_v18, %v2037_v14  ;;  %v217_v25 = vmul.f32 %v2043_v18, %v2032_v12  ;;  %v522_v26 = vmul.f32 %v471_v22, %v2024_v10  ;;  %p1891_p4 = scmp.ne.s32.totalorder %s1537_s1, %s1890_s18  ;;  %p1896_p6 = scmp.lt.s32.totalorder %s1890_s18, %s1890_s18 }
  0x52   :  { %1727 = vmatprep.subr.msk.bf16.mxu0 %vm2028_vm2, %v2049_v20  ;;  %v523_v29 = vmul.f32 %v471_v22, %v2032_v12  ;;  %v806_v30 = vmul.f32 %v755_v28, %v2024_v10  ;;  %v219_v32 = vmul.f32 %v2043_v18, %v2045_v19  ;;  %v524_v33 = vmul.f32 %v471_v22, %v2037_v14 }
  0x53   :  { %1647 = vmatprep.mubr.msk.f32.mxu1 %vm2337_vm1, %v216_v21  ;;  %v807_v35 = vmul.f32 %v755_v28, %v2032_v12  ;;  %v1090_v36 = vmul.f32 %v1039_v34, %v2024_v10  ;;  %v525_v37 = vmul.f32 %v471_v22, %v2045_v19  ;;  %v808_v38 = vmul.f32 %v755_v28, %v2037_v14  ;;  %p1897_p7 = por %p1896_p6, %p1895_p5 }
  0x54   :  { %1641 = vmatmul.mubr.msk.f32.vlgmr.msra.gmra.mrb[0].mxu0 %vm2337_vm1, %v82_v23  ;;  %v1091_v39 = vmul.f32 %v1039_v34, %v2032_v12  ;;  %v809_v40 = vmul.f32 %v755_v28, %v2045_v19  ;;  %v1092_v41 = vmul.f32 %v1039_v34, %v2037_v14  ;;  %v1093_v42 = vmul.f32 %v1039_v34, %v2045_v19 }
  0x55   :  { %1654 = vmatprep.mubr.msk.f32.mxu0 %vm2337_vm1, %v218_v24  ;;  %p1898_p8 = pnand %p1897_p7, %p1891_p4 }
  0x56   :  { %1648 = vmatmul.mubr.msk.f32.vlgmr.msra.gmra.mrb[0].mxu1 %vm2337_vm1, %v217_v25 }
  0x57   :  { %1736 = vmatpush3.bf16.xpose.msk.msra.mxu1 %vm2028_vm2, %v1719_v17  ;;  %1661 = vmatprep.mubr.msk.f32.mxu1 %vm2337_vm1, %v522_v26 }
  0x58   :  { %1745 = vmatprep.subr.msk.bf16.mxu1 %vm2028_vm2, %v1719_v17 }
  0x5a   :  { %1730 = vmatpush3.bf16.xpose.msk.msra.mxu0 %vm2028_vm2, %v2049_v20 }
  0x5b   :  { %1739 = vmatprep.subr.msk.bf16.mxu0 %vm2028_vm2, %v2049_v20 }
  0x5e   :  { %1662 = vmatmul.mubr.msk.f32.vlgmr.msra.gmra.mrb[2].mxu1 %vm2337_vm1, %v523_v29 }
  0x5f   :  { %1748 = vmatpush3.bf16.xpose.msk.msra.mxu1 %vm2028_vm2, %v1719_v17  ;;  %1675 = vmatprep.mubr.msk.f32.mxu1 %vm2337_vm1, %v806_v30 }
  0x60   :  { %1757 = vmatprep.subr.msk.bf16.mxu1 %vm2028_vm2, %v1719_v17 }
  0x61   :  { %1655 = vmatmul.mubr.msk.f32.vlgmr.msra.gmra.mrb[2].mxu0 %vm2337_vm1, %v219_v32 }
  0x62   :  { %1742 = vmatpush3.bf16.xpose.msk.msra.mxu0 %vm2028_vm2, %v2049_v20  ;;  %1668 = vmatprep.mubr.msk.f32.mxu0 %vm2337_vm1, %v524_v33 }
  0x63   :  { %1751 = vmatprep.subr.msk.bf16.mxu0 %vm2028_vm2, %v2049_v20 }
  0x66   :  { %1676 = vmatmul.mubr.msk.f32.vlgmr.msra.gmra.mrb[4].mxu1 %vm2337_vm1, %v807_v35 }
  0x67   :  { %1760 = vmatpush3.bf16.xpose.msk.msra.mxu1 %vm2028_vm2, %v1719_v17  ;;  %1689 = vmatprep.mubr.msk.f32.mxu1 %vm2337_vm1, %v1090_v36 }
  0x68   :  { %1768 = vmatprep.subr.bf16.mxu1 %v1719_v17 }
  0x69   :  { %1669 = vmatmul.mubr.msk.f32.vlgmr.msra.gmra.mrb[4].mxu0 %vm2337_vm1, %v525_v37 }
  0x6a   :  { %1754 = vmatpush3.bf16.xpose.msk.msra.mxu0 %vm2028_vm2, %v2049_v20  ;;  %1682 = vmatprep.mubr.msk.f32.mxu0 %vm2337_vm1, %v808_v38 }
  0x6b   :  { %1763 = vmatprep.subr.msk.bf16.mxu0 %vm2028_vm2, %v2049_v20 }
  0x6e   :  { %1690 = vmatmul.mubr.msk.f32.vlgmr.msra.gmra.mrb[6].mxu1 %vm2337_vm1, %v1091_v39 }
  0x6f   :  { %1770 = vmatpush3.bf16.msra.mxu1 %v1719_v17 }
  0x70   :  { %1772 = vmatprep.subr.bf16.mxu1 %v2049_v20 }
  0x71   :  { %1683 = vmatmul.mubr.msk.f32.vlgmr.msra.gmra.mrb[6].mxu0 %vm2337_vm1, %v809_v40 }
  0x72   :  { %1766 = vmatpush3.bf16.xpose.msk.msra.mxu0 %vm2028_vm2, %v2049_v20  ;;  %1696 = vmatprep.mubr.msk.f32.mxu0 %vm2337_vm1, %v1092_v41 }
  0x79   :  { %1697 = vmatmul.mubr.msk.f32.vlgmr.msra.gmra.mrb[8].mxu0 %vm2337_vm1, %v1093_v42 }
 0x127   :  { %v157_v47 = vpop.f32.mrb[0].mxu0 }
 0x128   :  { %v166_v48 = vmul.f32 %v2043_v18, %v157_v47  ;;  %v472_v49 = vmul.f32 %v471_v22, %v157_v47  ;;  %v756_v50 = vmul.f32 %v755_v28, %v157_v47  ;;  %v1642_v51 = vpop.f32.mrb[1].mxu0  ;;  %v1040_v52 = vmul.f32 %v1039_v34, %v157_v47 }
 0x129   :  { %v1649_v45 = vpop.f32.mrb[0].mxu1 }
 0x12a   :  { %v764_v53 = vrot.slane %v756_v50, %v173_v46  ;;  %v480_v54 = vrot.slane %v472_v49, %v173_v46  ;;  %v174_v55 = vrot.slane %v166_v48, %v173_v46  ;;  %v1048_v58 = vrot.slane %v1040_v52, %v173_v46 }
 0x12c   :  { %v488_v56 = vrot.slane %v480_v54, %v173_v46  ;;  %v182_v57 = vrot.slane %v174_v55, %v173_v46  ;;  %v772_v59 = vrot.slane %v764_v53, %v173_v46  ;;  %v1056_v1 = vrot.slane %v1048_v58, %v173_v46 }
 0x12d   :  { %v175_v5 = vcombine.high %v174_v55, %v174_v55  ;;  %v481_v15 = vcombine.high %v480_v54, %v480_v54  ;;  %v765_v24 = vcombine.high %v764_v53, %v764_v53  ;;  %v1049_v31 = vcombine.high %v1048_v58, %v1048_v58 }
 0x12e   :  { %v499_v60 = vrot.slane %v488_v56, %v2022_v4  ;;  %v193_v61 = vrot.slane %v182_v57, %v2022_v4  ;;  %v783_v0 = vrot.slane %v772_v59, %v2022_v4  ;;  %v1067_v11 = vrot.slane %v1056_v1, %v2022_v4 }
 0x12f   :  { %v189_v13 = vrot.slane %v175_v5, %v173_v46  ;;  %v495_v23 = vrot.slane %v481_v15, %v173_v46  ;;  %v779_v30 = vrot.slane %v765_v24, %v173_v46  ;;  %v1063_v35 = vrot.slane %v1049_v31, %v173_v46 }
 0x130   :  { %v506_v62 = vmul.f32 %v499_v60, %v2024_v10  ;;  %v200_v63 = vmul.f32 %v193_v61, %v2024_v10  ;;  %v507_v8 = vmul.f32 %v499_v60, %v2032_v12  ;;  %v201_v9 = vmul.f32 %v193_v61, %v2032_v12 }
 0x131   :  { %v791_v18 = vmul.f32 %v783_v0, %v2032_v12  ;;  %v790_v21 = vmul.f32 %v783_v0, %v2024_v10  ;;  %v1075_v22 = vmul.f32 %v1067_v11, %v2032_v12  ;;  %v1074_v27 = vmul.f32 %v1067_v11, %v2024_v10 }
 0x132   :  { %v510_v6 = vsel %vm2337_vm1, %v506_v62, 0.0  ;;  %v204_v7 = vsel %vm2337_vm1, %v200_v63, 0.0  ;;  %v513_v16 = vsel %vm2337_vm1, %v507_v8, 0.0  ;;  %v207_v17 = vsel %vm2337_vm1, %v201_v9, 0.0 }
 0x133   :  { %511 = vadd.xlane.f32.xlu1 %v510_v6  ;;  %205 = vadd.xlane.f32.xlu0 %v204_v7  ;;  %v797_v25 = vsel %vm2337_vm1, %v791_v18, 0.0  ;;  %v794_v26 = vsel %vm2337_vm1, %v790_v21, 0.0  ;;  %v197_v28 = vrot.slane %v189_v13, %v2022_v4  ;;  %v1081_v29 = vsel %vm2337_vm1, %v1075_v22, 0.0 }
 0x134   :  { %v1078_v32 = vsel %vm2337_vm1, %v1074_v27, 0.0  ;;  %v503_v34 = vrot.slane %v495_v23, %v2022_v4  ;;  %v787_v10 = vrot.slane %v779_v30, %v2022_v4  ;;  %v1071_v40 = vrot.slane %v1063_v35, %v2022_v4  ;;  %v298_v4 = vpop.f32.mrb[1].mxu1  ;;  %v2173_v52 = vpop.f32.mrb[2].mxu0  ;;  %v2210_v23 = vld [vmem:[#allocation7] sm:$0xff]  ;;  %v2212_v27 = vld [vmem:[#allocation7 + $0x8] sm:$0xff] }
 0x135   :  { %v203_v12 = vmul.f32 %v197_v28, %v2045_v19  ;;  %v202_v33 = vmul.f32 %v197_v28, %v2037_v14  ;;  %v1663_v53 = vpop.f32.mrb[2].mxu1  ;;  %v2175_v54 = vpop.f32.mrb[3].mxu0  ;;  %v399_v0 = vand.u32 127, %v162_v2  ;;  %vm460_vm4 = vcmp.eq.s32.totalorder %v2210_v23, 1 }
 0x136   :  { %v509_v38 = vmul.f32 %v503_v34, %v2045_v19  ;;  %v508_v39 = vmul.f32 %v503_v34, %v2037_v14  ;;  %v793_v43 = vmul.f32 %v787_v10, %v2045_v19  ;;  %v792_v44 = vmul.f32 %v787_v10, %v2037_v14  ;;  %v598_v55 = vpop.f32.mrb[3].mxu1 }
 0x137   :  { %514 = vadd.xlane.f32.xlu1 %v513_v16  ;;  %208 = vadd.xlane.f32.xlu0 %v207_v17  ;;  %v213_v36 = vsel %vm2337_vm1, %v203_v12, 0.0  ;;  %v210_v37 = vsel %vm2337_vm1, %v202_v33, 0.0  ;;  %v1077_v48 = vmul.f32 %v1071_v40, %v2045_v19  ;;  %v1076_v49 = vmul.f32 %v1071_v40, %v2037_v14 }
 0x138   :  { %v519_v41 = vsel %vm2337_vm1, %v509_v38, 0.0  ;;  %v516_v42 = vsel %vm2337_vm1, %v508_v39, 0.0  ;;  %v803_v46 = vsel %vm2337_vm1, %v793_v43, 0.0  ;;  %v800_v47 = vsel %vm2337_vm1, %v792_v44, 0.0 }
 0x139   :  { %v1087_v50 = vsel %vm2337_vm1, %v1077_v48, 0.0  ;;  %v1084_v51 = vsel %vm2337_vm1, %v1076_v49, 0.0  ;;  %v2177_v56 = vpop.f32.mrb[4].mxu1  ;;  %v404_v1 = vadd.s32 4294967288, %v399_v0  ;;  %v2199_v7 = vsub.s32 %v399_v0, %v2019_v3 }
 0x13a   :  { %v2179_v19 = vpop.f32.mrb[5].mxu1  ;;  %vm461_vm5 = vcmp.eq.s32.totalorder %v2212_v27, 1  ;;  %vm745_vm6 = vcmp.eq.s32.totalorder %v2212_v27, 2  ;;  %vm1029_vm11 = vcmp.eq.s32.totalorder %v2212_v27, 3  ;;  %vm744_vm12 = vcmp.eq.s32.totalorder %v2210_v23, 2 }
 0x13b   :  { %798 = vadd.xlane.f32.xlu1 %v797_v25  ;;  %795 = vadd.xlane.f32.xlu0 %v794_v26  ;;  %v2202_v8 = vsub.s32 %v404_v1, %v2019_v3  ;;  %vm1313_vm13 = vcmp.eq.s32.totalorder %v2212_v27, 4  ;;  %vm1028_vm15 = vcmp.eq.s32.totalorder %v2210_v23, 3 }
 0x13c   :  { %v2181_v14 = vpop.f32.mrb[4].mxu0 }
 0x13d   :  { %v2185_v58 = vpop.f32.mrb[5].mxu0 }
 0x13f   :  { %1082 = vadd.xlane.f32.xlu1 %v1081_v29  ;;  %1079 = vadd.xlane.f32.xlu0 %v1078_v32 }
 0x141   :  { %v2183_v57 = vpop.f32.mrb[6].mxu1 }
 0x142   :  { %v2187_v59 = vpop.f32.mrb[7].mxu1 }
 0x143   :  { %214 = vadd.xlane.f32.xlu1 %v213_v36  ;;  %211 = vadd.xlane.f32.xlu0 %v210_v37 }
 0x144   :  { %v2189_v60 = vpop.f32.mrb[6].mxu0 }
 0x145   :  { %v2191_v61 = vpop.f32.mrb[7].mxu0 }
 0x147   :  { %520 = vadd.xlane.f32.xlu1 %v519_v41  ;;  %517 = vadd.xlane.f32.xlu0 %v516_v42 }
 0x14b   :  { %804 = vadd.xlane.f32.xlu1 %v803_v46  ;;  %801 = vadd.xlane.f32.xlu0 %v800_v47 }
 0x14c   :  { %v2193_v62 = vpop.f32.mrb[8].mxu0 }
 0x14d   :  { %v2195_v63 = vpop.f32.mrb[9].mxu0 }
 0x14f   :  { %1088 = vadd.xlane.f32.xlu1 %v1087_v50  ;;  %1085 = vadd.xlane.f32.xlu0 %v1084_v51 }
 0x1c0   :  { %v512_v5 = vpop.xlane.xlu1 %511  ;;  %v206_v6 = vpop.xlane.xlu0 %205 }
 0x1c1   :  { %v695_v13 = vrot.slane %v512_v5, %v2199_v7  ;;  %v403_v15 = vrot.slane %v206_v6, %v2199_v7 }
 0x1c4   :  { %v515_v9 = vpop.xlane.xlu1 %514  ;;  %v209_v11 = vpop.xlane.xlu0 %208 }
 0x1c5   :  { %v699_v16 = vrot.slane %v515_v9, %v2202_v8  ;;  %v408_v2 = vrot.slane %v209_v11, %v2202_v8 }
 0x1c7   :  { %v700_v17 = vsel %vm409_vm3, %v699_v16, %v695_v13  ;;  %v410_v18 = vsel %vm409_vm3, %v408_v2, %v403_v15  ;;  %v2243_v13 = vld [vmem:[#allocation7 + $0x10] sm:$0xff] }
 0x1c8   :  { %v725_v21 = vadd.f32 %v700_v17, %v515_v9  ;;  %v441_v22 = vadd.f32 %v410_v18, %v209_v11  ;;  %v440_v3 = vadd.f32 %v410_v18, %v206_v6  ;;  %v799_v24 = vpop.xlane.xlu1 %798  ;;  %v796_v25 = vpop.xlane.xlu0 %795  ;;  %v724_v26 = vadd.f32 %v700_v17, %v512_v5  ;;  %v2241_v11 = vld [vmem:[#allocation7 + $0x18] sm:$0xff] }
 0x1c9   :  { %v983_v28 = vrot.slane %v799_v24, %v2202_v8  ;;  %v979_v29 = vrot.slane %v796_v25, %v2199_v7  ;;  %vm1031_vm1 = vcmp.eq.s32.totalorder %v2241_v11, 3 }
 0x1ca   :  { %v445_v30 = vadd.f32 %v1649_v45, %v441_v22  ;;  %v444_v31 = vadd.f32 %v440_v3, %v298_v4  ;;  %v729_v32 = vadd.f32 %v1663_v53, %v725_v21  ;;  %v728_v12 = vadd.f32 %v724_v26, %v598_v55 }
 0x1cb   :  { %v984_v33 = vsel %vm409_vm3, %v983_v28, %v979_v29 }
 0x1cc   :  { %vm449_vm7 = vcmp.gt.f32.partialorder %v445_v30, 0.0  ;;  %v453_v34 = vmul.f32 0.2, %v445_v30  ;;  %vm448_vm8 = vcmp.gt.f32.partialorder %v444_v31, 0.0  ;;  %v452_v10 = vmul.f32 0.2, %v444_v31  ;;  %v1083_v35 = vpop.xlane.xlu1 %1082  ;;  %v1080_v36 = vpop.xlane.xlu0 %1079 }
 0x1cd   :  { %vm733_vm9 = vcmp.gt.f32.partialorder %v729_v32, 0.0  ;;  %v737_v37 = vmul.f32 0.2, %v729_v32  ;;  %v1008_v38 = vadd.f32 %v984_v33, %v796_v25  ;;  %vm732_vm10 = vcmp.gt.f32.partialorder %v728_v12, 0.0 }
 0x1ce   :  { %v457_v39 = vsel %vm449_vm7, %v445_v30, %v453_v34  ;;  %v456_v40 = vsel %vm448_vm8, %v444_v31, %v452_v10  ;;  %v736_v41 = vmul.f32 0.2, %v728_v12  ;;  %v1267_v42 = vrot.slane %v1083_v35, %v2202_v8 }
 0x1cf   :  { %v2223_v43 = vsel %vm460_vm4, %v456_v40, -9e+15  ;;  %v1009_v44 = vadd.f32 %v984_v33, %v799_v24  ;;  %v1263_v45 = vrot.slane %v1080_v36, %v2199_v7  ;;  %v741_v46 = vsel %vm733_vm9, %v729_v32, %v737_v37 }
 0x1d0   :  { %v740_v47 = vsel %vm732_vm10, %v728_v12, %v736_v41  ;;  %v1012_v48 = vadd.f32 %v1008_v38, %v2179_v19  ;;  %v215_v49 = vpop.xlane.xlu1 %214  ;;  %v212_v4 = vpop.xlane.xlu0 %211  ;;  %v465_v50 = vsel %vm461_vm5, %v457_v39, -9e+15  ;;  %vm1312_vm4 = vcmp.eq.s32.totalorder %v2210_v23, 4 }
 0x1d1   :  { %v1013_v51 = vadd.f32 %v2177_v56, %v1009_v44  ;;  %v1268_v53 = vsel %vm409_vm3, %v1267_v42, %v1263_v45  ;;  %v418_v55 = vrot.slane %v215_v49, %v2202_v8  ;;  %v414_v0 = vrot.slane %v212_v4, %v2199_v7 }
 0x1d2   :  { %v1292_v1 = vadd.f32 %v1268_v53, %v1080_v36  ;;  %vm1016_vm0 = vcmp.gt.f32.partialorder %v1012_v48, 0.0  ;;  %v1020_v19 = vmul.f32 0.2, %v1012_v48  ;;  %v1293_v5 = vadd.f32 %v1268_v53, %v1083_v35 }
 0x1d3   :  { %vm1017_vm2 = vcmp.gt.f32.partialorder %v1013_v51, 0.0  ;;  %v1021_v6 = vmul.f32 0.2, %v1013_v51  ;;  %v419_v9 = vsel %vm409_vm3, %v418_v55, %v414_v0  ;;  %v749_v56 = vsel %vm745_vm6, %v741_v46, %v465_v50 }
 0x1d4   :  { %v1024_v15 = vsel %vm1016_vm0, %v1012_v48, %v1020_v19  ;;  %v1297_v16 = vadd.f32 %v2183_v57, %v1293_v5  ;;  %v442_v2 = vadd.f32 %v419_v9, %v212_v4  ;;  %v443_v17 = vadd.f32 %v419_v9, %v215_v49  ;;  %v521_v18 = vpop.xlane.xlu1 %520  ;;  %v518_v21 = vpop.xlane.xlu0 %517 }
 0x1d5   :  { %v1025_v22 = vsel %vm1017_vm2, %v1013_v51, %v1021_v6  ;;  %v1296_v3 = vadd.f32 %v1292_v1, %v2187_v59  ;;  %v708_v24 = vrot.slane %v521_v18, %v2202_v8  ;;  %v704_v25 = vrot.slane %v518_v21, %v2199_v7 }
 0x1d6   :  { %vm1301_vm5 = vcmp.gt.f32.partialorder %v1297_v16, 0.0  ;;  %v1305_v26 = vmul.f32 0.2, %v1297_v16  ;;  %v446_v28 = vadd.f32 %v442_v2, %v2175_v54  ;;  %v447_v29 = vadd.f32 %v2173_v52, %v443_v17 }
 0x1d7   :  { %vm463_vm6 = vcmp.eq.s32.totalorder %v2241_v11, 1  ;;  %vm462_vm7 = vcmp.eq.s32.totalorder %v2243_v13, 1  ;;  %vm1300_vm8 = vcmp.gt.f32.partialorder %v1296_v3, 0.0  ;;  %v1304_v57 = vmul.f32 0.2, %v1296_v3 }
 0x1d8   :  { %v709_v30 = vsel %vm409_vm3, %v708_v24, %v704_v25  ;;  %v1033_v59 = vsel %vm1029_vm11, %v1025_v22, %v749_v56  ;;  %vm747_vm9 = vcmp.eq.s32.totalorder %v2241_v11, 2  ;;  %vm450_vm10 = vcmp.gt.f32.partialorder %v446_v28, 0.0  ;;  %v805_v54 = vpop.xlane.xlu1 %804  ;;  %v802_v12 = vpop.xlane.xlu0 %801 }
 0x1d9   :  { %vm451_vm0 = vcmp.gt.f32.partialorder %v447_v29, 0.0  ;;  %v454_v31 = vmul.f32 0.2, %v446_v28  ;;  %v455_v32 = vmul.f32 0.2, %v447_v29  ;;  %vm746_vm2 = vcmp.eq.s32.totalorder %v2243_v13, 2 }
 0x1da   :  { %v726_v52 = vadd.f32 %v709_v30, %v518_v21  ;;  %v727_v33 = vadd.f32 %v709_v30, %v521_v18  ;;  %v992_v34 = vrot.slane %v805_v54, %v2202_v8  ;;  %v988_v10 = vrot.slane %v802_v12, %v2199_v7 }
 0x1db   :  { %vm1030_vm11 = vcmp.eq.s32.totalorder %v2243_v13, 3  ;;  %v458_v35 = vsel %vm450_vm10, %v446_v28, %v454_v31  ;;  %v1309_v36 = vsel %vm1301_vm5, %v1297_v16, %v1305_v26  ;;  %v748_v37 = vsel %vm744_vm12, %v740_v47, %v2223_v43 }
 0x1dc   :  { %v1308_v38 = vsel %vm1300_vm8, %v1296_v3, %v1304_v57  ;;  %v730_v39 = vadd.f32 %v726_v52, %v2185_v58  ;;  %v731_v40 = vadd.f32 %v2181_v14, %v727_v33  ;;  %v993_v41 = vsel %vm409_vm3, %v992_v34, %v988_v10  ;;  %v1089_v49 = vpop.xlane.xlu1 %1088  ;;  %v1086_v43 = vpop.xlane.xlu0 %1085 }
 0x1dd   :  { %v1317_v42 = vsel %vm1313_vm13, %v1309_v36, %v1033_v59  ;;  %v1010_v44 = vadd.f32 %v993_v41, %v802_v12  ;;  %v1011_v45 = vadd.f32 %v993_v41, %v805_v54  ;;  %v1032_v48 = vsel %vm1028_vm15, %v1024_v15, %v748_v37 }
 0x1de   :  { %v1324_v46 = vsel %vm1320_vm14, %v1317_v42, -inf  ;;  %vm734_vm12 = vcmp.gt.f32.partialorder %v730_v39, 0.0  ;;  %vm735_vm5 = vcmp.gt.f32.partialorder %v731_v40, 0.0  ;;  %v738_v47 = vmul.f32 0.2, %v730_v39 }
 0x1df   :  { %v739_v58 = vmul.f32 0.2, %v731_v40  ;;  %1325 = vmax.xlane.f32.xlu1 %v1324_v46  ;;  %v1015_v14 = vadd.f32 %v2189_v60, %v1011_v45  ;;  %v1014_v4 = vadd.f32 %v1010_v44, %v2191_v61  ;;  %v1316_v27 = vsel %vm1312_vm4, %v1308_v38, %v1032_v48 }
 0x1e0   :  { %v1276_v50 = vrot.slane %v1089_v49, %v2202_v8  ;;  %v1321_v51 = vsel %vm1320_vm14, %v1316_v27, -inf  ;;  %v1272_v53 = vrot.slane %v1086_v43, %v2199_v7  ;;  %v459_v55 = vsel %vm451_vm0, %v447_v29, %v455_v32 }
 0x1e1   :  { %v743_v0 = vsel %vm735_vm5, %v731_v40, %v739_v58  ;;  %v1023_v1 = vmul.f32 0.2, %v1015_v14  ;;  %vm1018_vm13 = vcmp.gt.f32.partialorder %v1014_v4, 0.0  ;;  %v1022_v19 = vmul.f32 0.2, %v1014_v4  ;;  %1322 = vmax.xlane.f32.xlu0 %v1321_v51 }
 0x1e2   :  { %vm1019_vm15 = vcmp.gt.f32.partialorder %v1015_v14, 0.0  ;;  %v1277_v60 = vsel %vm409_vm3, %v1276_v50, %v1272_v53  ;;  %v467_v61 = vsel %vm463_vm6, %v459_v55, -9e+15  ;;  %v466_v8 = vsel %vm462_vm7, %v458_v35, -9e+15 }
 0x1e3   :  { %v742_v23 = vsel %vm734_vm12, %v730_v39, %v738_v47  ;;  %v1026_v5 = vsel %vm1018_vm13, %v1014_v4, %v1022_v19  ;;  %v1294_v7 = vadd.f32 %v1277_v60, %v1086_v43  ;;  %v1295_v6 = vadd.f32 %v1277_v60, %v1089_v49 }
 0x1e4   :  { %v751_v9 = vsel %vm747_vm9, %v743_v0, %v467_v61  ;;  %v1027_v56 = vsel %vm1019_vm15, %v1015_v14, %v1023_v1  ;;  %v750_v15 = vsel %vm746_vm2, %v742_v23, %v466_v8  ;;  %vm1315_vm3 = vcmp.eq.s32.totalorder %v2241_v11, 4 }
 0x1e5   :  { %v1299_v16 = vadd.f32 %v2193_v62, %v1295_v6  ;;  %v1298_v2 = vadd.f32 %v1294_v7, %v2195_v63  ;;  %v1035_v17 = vsel %vm1031_vm1, %v1027_v56, %v751_v9  ;;  %v1034_v18 = vsel %vm1030_vm11, %v1026_v5, %v750_v15 }
 0x1e6   :  { %vm1314_vm4 = vcmp.eq.s32.totalorder %v2243_v13, 4  ;;  %vm2340_vm1 = vcmask 261120  }
 0x1e7   :  { %vm1303_vm6 = vcmp.gt.f32.partialorder %v1299_v16, 0.0  ;;  %v1307_v21 = vmul.f32 0.2, %v1299_v16  ;;  %vm1302_vm7 = vcmp.gt.f32.partialorder %v1298_v2, 0.0  ;;  %v1306_v22 = vmul.f32 0.2, %v1298_v2  ;;  %vm2341_vm8 = vmmov %vm2340_vm1 }
 0x1e8   :  { %vm2342_vm9 = vmmov %vm2340_vm1 }
 0x1e9   :  { %v1311_v3 = vsel %vm1303_vm6, %v1299_v16, %v1307_v21  ;;  %v1310_v24 = vsel %vm1302_vm7, %v1298_v2, %v1306_v22  ;;  %vm2343_vm10 = vmmov %vm2340_vm1 }
 0x1ea   :  { %v1319_v25 = vsel %vm1315_vm3, %v1311_v3, %v1035_v17  ;;  %v1318_v62 = vsel %vm1314_vm4, %v1310_v24, %v1034_v18 }
 0x1eb   :  { %v1330_v63 = vsel %vm1320_vm14, %v1319_v25, -inf  ;;  %v1327_v26 = vsel %vm1320_vm14, %v1318_v62, -inf }
 0x1ec   :  { %1331 = vmax.xlane.f32.xlu1 %v1330_v63  ;;  %1328 = vmax.xlane.f32.xlu0 %v1327_v26 }
 0x26c   :  { %v1326_v28 = vpop.xlane.xlu1 %1325 }
 0x26d   :  { %v1334_v29 = vsub.f32 %v1317_v42, %v1326_v28 }
 0x26e   :  { %v1323_v11 = vpop.xlane.xlu0 %1322 }
 0x26f   :  { %v1339_v57 = vmul.f32 1.442695, %v1334_v29  ;;  %v1333_v30 = vsub.f32 %v1316_v27, %v1323_v11 }
 0x271   :  { %1786 = vpow2.f32 %v1339_v57  ;;  %v1337_v13 = vmul.f32 1.442695, %v1333_v30 }
 0x273   :  { %1788 = vpow2.f32 %v1337_v13 }
 0x279   :  { %v1332_v59 = vpop.xlane.xlu1 %1331  ;;  %v1329_v31 = vpop.xlane.xlu0 %1328 }
 0x27a   :  { %v1336_v54 = vsub.f32 %v1319_v25, %v1332_v59  ;;  %v1335_v12 = vsub.f32 %v1318_v62, %v1329_v31 }
 0x27b   :  { %v1787_v32 = vpop.eup %1786 }
 0x27c   :  { %v1348_v52 = vsel %vm1320_vm14, %v1787_v32, 0.0  ;;  %v1343_v33 = vmul.f32 1.442695, %v1336_v54  ;;  %v1341_v34 = vmul.f32 1.442695, %v1335_v12 }
 0x27d   :  { %1349 = vadd.xlane.f32.xlu1 %v1348_v52  ;;  %v1789_v10 = vpop.eup %1788 }
 0x27e   :  { %1790 = vpow2.f32 %v1343_v33  ;;  %v1345_v35 = vsel %vm1320_vm14, %v1789_v10, 0.0 }
 0x27f   :  { %1792 = vpow2.f32 %v1341_v34  ;;  %1346 = vadd.xlane.f32.xlu0 %v1345_v35 }
 0x288   :  { %v1791_v36 = vpop.eup %1790 }
 0x289   :  { %v1793_v37 = vpop.eup %1792  ;;  %v1354_v38 = vsel %vm1320_vm14, %v1791_v36, 0.0 }
 0x28a   :  { %1355 = vadd.xlane.f32.xlu1 %v1354_v38  ;;  %v1351_v39 = vsel %vm1320_vm14, %v1793_v37, 0.0 }
 0x28b   :  { %1352 = vadd.xlane.f32.xlu0 %v1351_v39 }
 0x30a   :  { %v1350_v40 = vpop.xlane.xlu1 %1349 }
 0x30b   :  { %1794 = vrcp.f32 %v1350_v40 }
 0x30c   :  { %v1347_v41 = vpop.xlane.xlu0 %1346 }
 0x30d   :  { %1796 = vrcp.f32 %v1347_v41 }
 0x315   :  { %v1795_v42 = vpop.eup %1794 }
 0x316   :  { %v1360_v45 = vmul.f32 %v1795_v42, %v1787_v32 }
 0x317   :  { %v1797_v44 = vpop.eup %1796  ;;  %v1356_v46 = vpop.xlane.xlu1 %1355 }
 0x318   :  { %v1358_v48 = vmul.f32 %v1797_v44, %v1789_v10  ;;  %1798 = vrcp.f32 %v1356_v46  ;;  %v1353_v49 = vpop.xlane.xlu0 %1352 }
 0x319   :  { %1800 = vrcp.f32 %v1353_v49 }
 0x31a   :  { %1703 = vmatprep.mubr.msk.f32.mxu1 %vm1320_vm14, %v1358_v48 }
 0x31b   :  { %1704 = vmatmul.mubr.msk.f32.vlgmr.msra.gmra.mrb[8].mxu1 %vm1320_vm14, %v1360_v45 }
 0x31c   :  { %1774 = vmatpush3.bf16.msra.mxu1 %v2049_v20 }
 0x322   :  { %v1799_v43 = vpop.eup %1798 }
 0x323   :  { %v1801_v47 = vpop.eup %1800  ;;  %v1364_v58 = vmul.f32 %v1799_v43, %v1791_v36 }
 0x324   :  { %v1362_v14 = vmul.f32 %v1801_v47, %v1793_v37 }
 0x326   :  { %1710 = vmatprep.mubr.msk.f32.mxu1 %vm1320_vm14, %v1362_v14 }
 0x327   :  { %1711 = vmatmul.mubr.msk.f32.vlgmr.msra.gmra.mrb[10].mxu1 %vm1320_vm14, %v1364_v58 }
 0x3ee   :  { %v1705_v4 = vpop.f32.mrb[8].mxu1 }
 0x3ef   :  { %1528 = vst.msk [vmem:[#allocation10 + $0x8] sm:$0xff] %vm2340_vm1, %v1705_v4  ;;  %v1437_v27 = vpop.f32.mrb[9].mxu1 }
 0x3f0   :  { %1527 = vst.msk [vmem:[#allocation10] sm:$0xff] %vm2341_vm8, %v1437_v27 }
 0x3fa   :  { %v1712_v50 = vpop.f32.mrb[10].mxu1 }
 0x3fb   :  { %1530 = vst.msk [vmem:[#allocation10 + $0x18] sm:$0xff] %vm2342_vm9, %v1712_v50  ;;  %v1518_v20 = vpop.f32.mrb[11].mxu1 }
 0x3fc   :  { %1529 = vst.msk [vmem:[#allocation10 + $0x10] sm:$0xff] %vm2343_vm10, %v1518_v20 }
 0x3fd   :  { %1901 = shalt.err (!%p1898_p8)
}
 0x3fe   :  { %s1902_s21 = scalar_lea.hbm %s2336_s5, 512 }
 0x3ff   :  { %p1903_p9 = scmp.ne.s32.totalorder %s2336_s5, %s1902_s21  ;;  %p1906_p10 = scmp.lt.u32.totalorder %s1902_s21, %s2336_s5 }
 0x401   :  { %p1908_p11 = pnand %p1906_p10, %p1903_p9 }
 0x403   :  { %1911 = shalt.err (!%p1908_p11)
}
 0x404   :  { %1542 = dma.vmem_to_hbm [thread:$0]  %s1537_s1, 512, %s2336_s5, [#allocation4], %s1921_s28, %s1921_s28, %s1922_s29  }
 0x405   :  { %1918 = dma.done.wait [#allocation4], 512  }
 0x406   :  { %1919 = vsyncadd [#allocation4], 4294966784 }
 0x407   :  { %1546 = vsyncpa [#allocation3], 1 }
 0x408   :  { %1547 = vsyncpa [#allocation6], 1 }
 0x409   :  { %1548 = vsyncpa [#allocation9], 1 }
 0x40a   :  { %1549 = vsyncpa [#allocation4], 1 }

</bundles_post_ra>
